<compile_context>
chip_gen: v7x
topology: tpu7x:2x2x1
jax: 0.10.0
libtpu: 0.0.40
codegen_flags: <defaults>
</compile_context>

<pallas_src>
import functools
import math

import jax
import jax.numpy as jnp
from jax.experimental import pallas as pl
from jax.experimental.pallas import tpu as pltpu


def _attn_kernel(x_ref, mask_ref, wqkv_ref, bqkv_ref, o_ref, *, head_dim):
    # x_ref:    (Bt, S, E)   f32
    # mask_ref: (Bt, 1, S)   f32 raw {0,1} mask
    # wqkv_ref: (E, 3D)      bf16 fused [Wq/sqrt(D) | Wk | Wv]
    # bqkv_ref: (1, 3D)      f32  fused [bq/sqrt(D) | bk | bv]
    # o_ref:    (Bt, 1, S*D) f32  lane-dense output slab
    bt, s, e = x_ref.shape
    d = head_dim

    # Fused QKV projection as one (Bt*S, E) @ (E, 3D) MXU matmul: bf16 in, f32 acc.
    # (merge/split of leading dims keeps the lane dim unchanged -> cheap reshapes)
    x2 = x_ref[...].reshape(bt * s, e).astype(jnp.bfloat16)
    qkv = jnp.dot(x2, wqkv_ref[...], preferred_element_type=jnp.float32)
    qkv = (qkv + bqkv_ref[...]).reshape(bt, s, 3 * d)
    q = qkv[:, :, 0:d]            # 1/sqrt(D) already folded into the packed params
    k = qkv[:, :, d:2 * d]
    v = qkv[:, :, 2 * d:3 * d]

    # scores = q @ k^T (batched over Bt) without materializing a transpose of k.
    scores = jnp.einsum("bqd,bkd->bqk",
                        q.astype(jnp.bfloat16), k.astype(jnp.bfloat16),
                        preferred_element_type=jnp.float32)            # (Bt, S, S)

    # masked_fill(mask == 0, -1e9): compare+select on an (Bt, 1, S) vector in-kernel;
    # broadcasts over query rows.  A fully-masked row yields a uniform softmax, which
    # matches the torch masked_fill reference semantics (intentional).
    bias = jnp.where(mask_ref[...] == 0,
                     jnp.float32(-1000000000.0), jnp.float32(0.0))     # (Bt, 1, S)
    scores = scores + bias

    # Numerically stable softmax, kept in f32 (v5e-friendly); divide on the EUP.
    scores = scores - jnp.max(scores, axis=-1, keepdims=True)
    p = jnp.exp(scores)
    p = p * pl.reciprocal(jnp.sum(p, axis=-1, keepdims=True), approx=True)

    out = jnp.einsum("bqk,bkd->bqd",
                     p.astype(jnp.bfloat16), v.astype(jnp.bfloat16),
                     preferred_element_type=jnp.float32)               # (Bt, S, D)

    # Lane-dense store: lay the S rows of D side-by-side along lanes so the output
    # block's last dim is S*D (=128 here) -> unmasked full-lane stores.  Built from
    # static sublane slices + lane-axis concatenation (well-supported lowering).
    out_flat = jnp.concatenate([out[:, i:i + 1, :] for i in range(s)], axis=-1)
    o_ref[...] = out_flat.astype(o_ref.dtype)


def pack_attention_params(wq, bq, wk, bk, wv, bv):
    """One-time parameter packing — call once at setup, NOT per forward pass.

    Returns (wqkv, bqkv): fused (E, 3D) bf16 weight [Wq*s | Wk | Wv] and fused
    (1, 3D) f32 bias [bq*s | bk | bv] with s = 1/sqrt(D) folded into the Q slice
    (exact in bf16 for power-of-two D), so the kernel never applies the scale.
    """
    d = wq.shape[1]
    scale = 1.0 / math.sqrt(d)
    wqkv = jnp.concatenate([wq * scale, wk, wv], axis=1).astype(jnp.bfloat16)
    bqkv = jnp.concatenate([bq * scale, bk, bv], axis=0).reshape(1, 3 * d)
    return wqkv, bqkv.astype(jnp.float32)


def _default_num_batch_blocks(batch):
    """One grid step per TensorCore: 2 on v7x (2 TC/chip), 1 on v5e/v6e."""
    try:
        kind = jax.devices()[0].device_kind.lower()
    except Exception:
        kind = ""
    n_tc = 2 if "v7" in kind else 1
    nb = max(1, min(batch, n_tc))
    while batch % nb != 0:
        nb -= 1
    return nb


def masked_self_attention(x, mask, wqkv, bqkv, *, num_batch_blocks=None):
    """x: (B, S, E) f32, mask: (B, S) {0,1}; wqkv/bqkv from pack_attention_params."""
    B, S, E = x.shape
    D3 = wqkv.shape[1]
    D = D3 // 3

    nb = num_batch_blocks if num_batch_blocks is not None else _default_num_batch_blocks(B)
    assert B % nb == 0, "number of batch blocks must divide the batch size"
    Bt = B // nb

    # Free metadata reshape of the raw mask (no precomputed bias array / extra HBM op).
    mask3 = mask.astype(jnp.float32).reshape(B, 1, S)

    kernel = functools.partial(_attn_kernel, head_dim=D)

    # NOTE(scaling): for large S, switch to a flash-style grid (nb, S//tq) with an
    # online-softmax loop over KV tiles; re-derive tiles per chip (v7x: 64 MiB VMEM,
    # v5e: 16 MiB default scoped limit) and set vmem_limit_bytes explicitly.  At
    # model-scale E/3D, mark the grid-invariant wqkv spec pl.Buffered(1) (or stage it
    # once into scratch) to avoid double-buffering the weight footprint.
    out = pl.pallas_call(
        kernel,
        out_shape=jax.ShapeDtypeStruct((B, 1, S * D), jnp.float32),
        grid_spec=pltpu.PrefetchScalarGridSpec(
            num_scalar_prefetch=0,
            grid=(nb,),
            in_specs=[
                pl.BlockSpec((Bt, S, E), lambda b: (b, 0, 0)),     # x
                pl.BlockSpec((Bt, 1, S), lambda b: (b, 0, 0)),     # raw mask
                pl.BlockSpec((E, D3), lambda b: (0, 0)),           # fused W_qkv (grid-invariant)
                pl.BlockSpec((1, D3), lambda b: (0, 0)),           # fused b_qkv (grid-invariant)
            ],
            out_specs=pl.BlockSpec((Bt, 1, S * D), lambda b: (b, 0, 0)),
        ),
        compiler_params=pltpu.CompilerParams(
            # batch blocks are independent -> shards across the 2 TCs on v7x
            dimension_semantics=("parallel",)),
    )(x, mask3, wqkv, bqkv)

    # (B, 1, S*D) -> (B, S, D) is contiguous: free metadata reshape for the caller.
    return out.reshape(B, S, D)


def _reference(x, mask, wq, bq, wk, bk, wv, bv):
    B, S, E = x.shape
    D = wq.shape[1]
    q = x @ wq + bq
    k = x @ wk + bk
    v = x @ wv + bv
    s = jnp.einsum("bqd,bkd->bqk", q, k) / jnp.sqrt(jnp.float32(D))
    m = mask.reshape(B, 1, S)
    s = jnp.where(m == 0, -1000000000.0, s)
    p = jax.nn.softmax(s, axis=-1)
    return jnp.einsum("bqk,bkd->bqd", p, v)


if __name__ == "__main__":
    B, S, E, D = 2, 8, 32, 16   # batch, seq, embedding_dimension, head_dimension

    key = jax.random.PRNGKey(0)
    kx, kq, kk, kv, kbq, kbk, kbv, km = jax.random.split(key, 8)

    x = jax.random.normal(kx, (B, S, E), dtype=jnp.float32)
    # positions < S-2 visible for batch 0, all visible for batch 1
    mask = jnp.stack([
        jnp.where(jnp.arange(S) < S - 2, 1.0, 0.0),
        jnp.ones((S,), jnp.float32),
    ]).astype(jnp.float32)

    # deterministic parameter init (mirrors nn.Linear shapes, stored transposed)
    wq = jax.random.normal(kq, (E, D), dtype=jnp.float32) * 0.1
    wk = jax.random.normal(kk, (E, D), dtype=jnp.float32) * 0.1
    wv = jax.random.normal(kv, (E, D), dtype=jnp.float32) * 0.1
    bq = jax.random.normal(kbq, (D,), dtype=jnp.float32) * 0.1
    bk = jax.random.normal(kbk, (D,), dtype=jnp.float32) * 0.1
    bv = jax.random.normal(kbv, (D,), dtype=jnp.float32) * 0.1

    # One-time packing (hoisted out of the per-call hot path).
    wqkv, bqkv = pack_attention_params(wq, bq, wk, bk, wv, bv)

    out = masked_self_attention(x, mask, wqkv, bqkv)
    out = jax.block_until_ready(out)

    ref = _reference(x, mask, wq, bq, wk, bk, wv, bv)
    assert out.shape == (B, S, D)
    # bf16 MXU operands (f32 accumulation) -> tolerance relaxed vs. pure-f32 path.
    assert jnp.allclose(out, ref, atol=3e-2, rtol=3e-2), \
        f"max abs err {jnp.max(jnp.abs(out - ref))}"

    print("KERNEL_OK")
</pallas_src>

<mosaic_0001>
module attributes {stable_mosaic.version = 11 : i64} {
  func.func @_attn_kernel(%arg0: i32, %arg1: memref<2x8x32xf32, #tpu.memory_space<vmem>>, %arg2: memref<2x1x8xf32, #tpu.memory_space<vmem>>, %arg3: memref<32x48xbf16, #tpu.memory_space<vmem>>, %arg4: memref<1x48xf32, #tpu.memory_space<vmem>>, %arg5: memref<2x1x128xf32, #tpu.memory_space<vmem>>) attributes {dimension_semantics = [#tpu.dimension_semantics<parallel>], iteration_bounds = array<i64: 1>, scalar_prefetch = 0 : i64, scratch_operands = 0 : i64, tpu.core_type = #tpu.core_type<tc>, window_params = [{transform_indices = @transform_0, window_bounds = array<i64: 2, 8, 32>}, {transform_indices = @transform_1, window_bounds = array<i64: 2, 1, 8>}, {pipeline_mode = #tpu.pipeline_mode<synchronous>, transform_indices = @transform_2, window_bounds = array<i64: 32, 48>}, {pipeline_mode = #tpu.pipeline_mode<synchronous>, transform_indices = @transform_3, window_bounds = array<i64: 1, 48>}, {transform_indices = @transform_4, window_bounds = array<i64: 2, 1, 128>}]} {
    %c0 = arith.constant 0 : index
    %c0_0 = arith.constant 0 : index
    %c0_1 = arith.constant 0 : index
    %0 = vector.load %arg1[%c0, %c0_0, %c0_1] : memref<2x8x32xf32, #tpu.memory_space<vmem>>, vector<2x8x32xf32>
    %1 = vector.shape_cast %0 : vector<2x8x32xf32> to vector<16x32xf32>
    %2 = arith.truncf %1 : vector<16x32xf32> to vector<16x32xbf16>
    %c0_2 = arith.constant 0 : index
    %c0_3 = arith.constant 0 : index
    %3 = vector.load %arg3[%c0_2, %c0_3] : memref<32x48xbf16, #tpu.memory_space<vmem>>, vector<32x48xbf16>
    %cst = arith.constant dense<0.000000e+00> : vector<16x48xf32>
    %4 = tpu.matmul %2, %3, %cst {dimension_numbers = #tpu.dot_dimension_numbers<[1], [0], [0], [1], [0, 0, 1, 1], [], []>} : vector<16x32xbf16>, vector<32x48xbf16>, vector<16x48xf32> -> vector<16x48xf32>
    %c0_4 = arith.constant 0 : index
    %c0_5 = arith.constant 0 : index
    %5 = vector.load %arg4[%c0_4, %c0_5] : memref<1x48xf32, #tpu.memory_space<vmem>>, vector<1x48xf32>
    %6 = vector.broadcast %5 : vector<1x48xf32> to vector<16x48xf32>
    %7 = arith.addf %4, %6 : vector<16x48xf32>
    %8 = vector.shape_cast %7 : vector<16x48xf32> to vector<2x8x48xf32>
    %9 = vector.extract_strided_slice %8 {offsets = [0, 0, 0], sizes = [2, 8, 16], strides = [1, 1, 1]} : vector<2x8x48xf32> to vector<2x8x16xf32>
    %10 = vector.extract_strided_slice %8 {offsets = [0, 0, 16], sizes = [2, 8, 16], strides = [1, 1, 1]} : vector<2x8x48xf32> to vector<2x8x16xf32>
    %11 = vector.extract_strided_slice %8 {offsets = [0, 0, 32], sizes = [2, 8, 16], strides = [1, 1, 1]} : vector<2x8x48xf32> to vector<2x8x16xf32>
    %12 = arith.truncf %9 : vector<2x8x16xf32> to vector<2x8x16xbf16>
    %13 = arith.truncf %10 : vector<2x8x16xf32> to vector<2x8x16xbf16>
    "tpu.trace_start"() <{level = 10 : i32, message = "bqd,bkd->bqk"}> : () -> ()
    %cst_6 = arith.constant dense<0.000000e+00> : vector<2x8x8xf32>
    %14 = tpu.matmul %12, %13, %cst_6 {dimension_numbers = #tpu.dot_dimension_numbers<[2], [2], [1], [1], [0, 0, 0, 1, 1, 1], [0], [0]>} : vector<2x8x16xbf16>, vector<2x8x16xbf16>, vector<2x8x8xf32> -> vector<2x8x8xf32>
    "tpu.trace_stop"() : () -> ()
    %c0_7 = arith.constant 0 : index
    %c0_8 = arith.constant 0 : index
    %c0_9 = arith.constant 0 : index
    %15 = vector.load %arg2[%c0_7, %c0_8, %c0_9] : memref<2x1x8xf32, #tpu.memory_space<vmem>>, vector<2x1x8xf32>
    %cst_10 = arith.constant 0.000000e+00 : f32
    %16 = vector.broadcast %cst_10 : f32 to vector<2x1x8xf32>
    %17 = arith.cmpf oeq, %15, %16 : vector<2x1x8xf32>
    %cst_11 = arith.constant -1.000000e+09 : f32
    %cst_12 = arith.constant 0.000000e+00 : f32
    %18 = vector.broadcast %cst_11 : f32 to vector<2x1x8xf32>
    %19 = vector.broadcast %cst_12 : f32 to vector<2x1x8xf32>
    %20 = arith.select %17, %18, %19 : vector<2x1x8xi1>, vector<2x1x8xf32>
    %21 = vector.broadcast %20 : vector<2x1x8xf32> to vector<2x8x8xf32>
    %22 = arith.addf %14, %21 : vector<2x8x8xf32>
    %cst_13 = arith.constant dense<0xFF800000> : vector<2x8xf32>
    %23 = vector.multi_reduction <maximumf>, %22, %cst_13 [2] : vector<2x8x8xf32> to vector<2x8xf32>
    %24 = vector.shape_cast %23 : vector<2x8xf32> to vector<2x8x1xf32>
    %25 = vector.broadcast %24 : vector<2x8x1xf32> to vector<2x8x8xf32>
    %26 = arith.subf %22, %25 : vector<2x8x8xf32>
    %27 = math.exp %26 : vector<2x8x8xf32>
    %cst_14 = arith.constant dense<0.000000e+00> : vector<2x8xf32>
    %28 = vector.multi_reduction <add>, %27, %cst_14 [2] : vector<2x8x8xf32> to vector<2x8xf32>
    %29 = vector.shape_cast %28 : vector<2x8xf32> to vector<2x8x1xf32>
    %30 = tpu.reciprocal %29 {approx = true} : vector<2x8x1xf32> -> vector<2x8x1xf32>
    %31 = vector.broadcast %30 : vector<2x8x1xf32> to vector<2x8x8xf32>
    %32 = arith.mulf %27, %31 : vector<2x8x8xf32>
    %33 = arith.truncf %32 : vector<2x8x8xf32> to vector<2x8x8xbf16>
    %34 = arith.truncf %11 : vector<2x8x16xf32> to vector<2x8x16xbf16>
    "tpu.trace_start"() <{level = 10 : i32, message = "bqk,bkd->bqd"}> : () -> ()
    %cst_15 = arith.constant dense<0.000000e+00> : vector<2x8x16xf32>
    %35 = tpu.matmul %33, %34, %cst_15 {dimension_numbers = #tpu.dot_dimension_numbers<[2], [1], [1], [2], [0, 0, 0, 1, 1, 2], [0], [0]>} : vector<2x8x8xbf16>, vector<2x8x16xbf16>, vector<2x8x16xf32> -> vector<2x8x16xf32>
    "tpu.trace_stop"() : () -> ()
    %36 = vector.extract_strided_slice %35 {offsets = [0, 0, 0], sizes = [2, 1, 16], strides = [1, 1, 1]} : vector<2x8x16xf32> to vector<2x1x16xf32>
    %37 = vector.extract_strided_slice %35 {offsets = [0, 1, 0], sizes = [2, 1, 16], strides = [1, 1, 1]} : vector<2x8x16xf32> to vector<2x1x16xf32>
    %38 = vector.extract_strided_slice %35 {offsets = [0, 2, 0], sizes = [2, 1, 16], strides = [1, 1, 1]} : vector<2x8x16xf32> to vector<2x1x16xf32>
    %39 = vector.extract_strided_slice %35 {offsets = [0, 3, 0], sizes = [2, 1, 16], strides = [1, 1, 1]} : vector<2x8x16xf32> to vector<2x1x16xf32>
    %40 = vector.extract_strided_slice %35 {offsets = [0, 4, 0], sizes = [2, 1, 16], strides = [1, 1, 1]} : vector<2x8x16xf32> to vector<2x1x16xf32>
    %41 = vector.extract_strided_slice %35 {offsets = [0, 5, 0], sizes = [2, 1, 16], strides = [1, 1, 1]} : vector<2x8x16xf32> to vector<2x1x16xf32>
    %42 = vector.extract_strided_slice %35 {offsets = [0, 6, 0], sizes = [2, 1, 16], strides = [1, 1, 1]} : vector<2x8x16xf32> to vector<2x1x16xf32>
    %43 = vector.extract_strided_slice %35 {offsets = [0, 7, 0], sizes = [2, 1, 16], strides = [1, 1, 1]} : vector<2x8x16xf32> to vector<2x1x16xf32>
    %44 = tpu.concatenate %36, %37, %38, %39, %40, %41, %42, %43 in 2 : vector<2x1x16xf32>, vector<2x1x16xf32>, vector<2x1x16xf32>, vector<2x1x16xf32>, vector<2x1x16xf32>, vector<2x1x16xf32>, vector<2x1x16xf32>, vector<2x1x16xf32> -> vector<2x1x128xf32>
    %c0_16 = arith.constant 0 : index
    %c0_17 = arith.constant 0 : index
    %c0_18 = arith.constant 0 : index
    %45 = vector.load %arg5[%c0_16, %c0_17, %c0_18] : memref<2x1x128xf32, #tpu.memory_space<vmem>>, vector<2x1x128xf32>
    tpu.vector_store %arg5[%c0_16, %c0_17, %c0_18], %44 {strides = array<i32>} : memref<2x1x128xf32, #tpu.memory_space<vmem>>, vector<2x1x128xf32>,
    return
  }
  func.func @transform_0(%arg0: i32) -> (i32, i32, i32) {
    %c0_i32 = arith.constant 0 : i32
    %c0_i32_0 = arith.constant 0 : i32
    %c0_i32_1 = arith.constant 0 : i32
    return %arg0, %c0_i32, %c0_i32_0 : i32, i32, i32
  }
  func.func @transform_1(%arg0: i32) -> (i32, i32, i32) {
    %c0_i32 = arith.constant 0 : i32
    %c0_i32_0 = arith.constant 0 : i32
    %c0_i32_1 = arith.constant 0 : i32
    return %arg0, %c0_i32, %c0_i32_0 : i32, i32, i32
  }
  func.func @transform_2(%arg0: i32) -> (i32, i32) {
    %c0_i32 = arith.constant 0 : i32
    %c0_i32_0 = arith.constant 0 : i32
    %c0_i32_1 = arith.constant 0 : i32
    return %c0_i32, %c0_i32_0 : i32, i32
  }
  func.func @transform_3(%arg0: i32) -> (i32, i32) {
    %c0_i32 = arith.constant 0 : i32
    %c0_i32_0 = arith.constant 0 : i32
    %c0_i32_1 = arith.constant 0 : i32
    return %c0_i32, %c0_i32_0 : i32, i32
  }
  func.func @transform_4(%arg0: i32) -> (i32, i32, i32) {
    %c0_i32 = arith.constant 0 : i32
    %c0_i32_0 = arith.constant 0 : i32
    %c0_i32_1 = arith.constant 0 : i32
    return %arg0, %c0_i32, %c0_i32_0 : i32, i32, i32
  }
}

</mosaic_0001>

<bundles_post_ra>
// kernel: tpu_custom_call.1
= control target key start
LH: loop header
LB: loop body
LE: loop exit
PB: predicated region body
PF: predicated region fallthrough
CT: control target
= control target key end

     0   :  { %9 = vsyncpa [#allocation3], 0  ;;  %s739_s0 = inlined_call_operand.hbm [shape: f32[2,8,32], index: 0, kind: input, shape index: {}]   ;;  %s740_s1 = inlined_call_operand.vmem [shape: f32[2,1,8], index: 1, kind: input, shape index: {}]   ;;  %s741_s2 = inlined_call_operand.hbm [shape: bf16[32,48], index: 2, kind: input, shape index: {}]   ;;  %s742_s3 = inlined_call_operand.vmem [shape: f32[1,48], index: 3, kind: input, shape index: {}]   ;;  %s743_s4 = inlined_call_operand.hbm [shape: f32[2,1,128], index: 4, kind: output, shape index: {}]  }
   0x1   :  { %10 = vsyncpa [#allocation6], 0 }
   0x2   :  { %11 = vsyncpa [#allocation4], 0  ;;  %s605_s15 = smov [#allocation2]   ;;  %s533_s19 = scalar_lea.hbm %s739_s0, 256 }
   0x3   :  { %s17_s16 = sshll.u32 %s605_s15, 4  ;;  %p534_p0 = scmp.ne.s32.totalorder %s739_s0, %s533_s19  ;;  %s18_s16 = int_to_ptr.vmem [resolvable:$true] %s17_s16 }
   0x4   :  { %p537_p1 = scmp.lt.u32.totalorder %s533_s19, %s739_s0 }
   0x6   :  { %p539_p2 = pnand %p537_p1, %p534_p0 }
   0x8   :  { %542 = shalt.err (!%p539_p2)
}
   0x9   :  { %s543_s24 = scalar_lea.vmem %s18_s16, 256  ;;  %p548_p4 = scmp.lt.s32.totalorder %s18_s16, %s18_s16 }
   0xa   :  { %p544_p3 = scmp.ne.s32.totalorder %s18_s16, %s543_s24  ;;  %p549_p5 = scmp.lt.s32.totalorder %s543_s24, %s543_s24 }
   0xc   :  { %p550_p6 = por %p549_p5, %p548_p4 }
   0xe   :  { %p551_p7 = pnand %p550_p6, %p544_p3 }
  0x10   :  { %554 = shalt.err (!%p551_p7)
}
  0x11   :  { %s606_s25 = smov 128   ;;  %s607_s26 = smov 8  }
  0x12   :  { %23 = dma.hbm_to_vmem [thread:$0]  %s739_s0, 256, %s18_s16, [#allocation3], %s606_s25, %s606_s25, %s607_s26  }
  0x13   :  { %s608_s29 = smov [#allocation5]   ;;  %s555_s7 = scalar_lea.hbm %s741_s2, 256 }
  0x14   :  { %s31_s30 = sshll.u32 %s608_s29, 4  ;;  %p556_p8 = scmp.ne.s32.totalorder %s741_s2, %s555_s7  ;;  %s32_s30 = int_to_ptr.vmem [resolvable:$true] %s31_s30 }
  0x15   :  { %p559_p9 = scmp.lt.u32.totalorder %s555_s7, %s741_s2 }
  0x17   :  { %p561_p10 = pnand %p559_p9, %p556_p8 }
  0x19   :  { %564 = shalt.err (!%p561_p10)
}
  0x1a   :  { %s565_s12 = scalar_lea.vmem %s32_s30, 256  ;;  %p570_p12 = scmp.lt.s32.totalorder %s32_s30, %s32_s30 }
  0x1b   :  { %p566_p11 = scmp.ne.s32.totalorder %s32_s30, %s565_s12  ;;  %p571_p13 = scmp.lt.s32.totalorder %s565_s12, %s565_s12 }
  0x1d   :  { %p572_p0 = por %p571_p13, %p570_p12 }
  0x1f   :  { %p573_p1 = pnand %p572_p0, %p566_p11 }
  0x21   :  { %576 = shalt.err (!%p573_p1)
}
  0x22   :  { %s609_s0 = smov 64   ;;  %s610_s13 = smov 4  }
  0x23   :  { %37 = dma.hbm_to_vmem [thread:$0]  %s741_s2, 256, %s32_s30, [#allocation6], %s609_s0, %s609_s0, %s610_s13  }
  0x24   :  { %599 = dma.done.wait [#allocation3], 256  }
  0x25   :  { %600 = vsyncadd [#allocation3], 4294967040 }
  0x26   :  { %601 = dma.done.wait [#allocation6], 256  }
  0x27   :  { %602 = vsyncadd [#allocation6], 4294967040  ;;  %v611_v0 = vmov 0.0   ;;  %vm612_vm0 = vmmov 0   ;;  %v523_v1 = vld [vmem:[#allocation5] sm:$0xff]   ;;  %v524_v2 = vld [vmem:[#allocation5 + $0x8] sm:$0xff]   ;;  %v128_v19 = vlaneseq }
  0x28   :  { %475 = vmatprep.subr.bf16.mxu0 %v611_v0  ;;  %479 = vmatprep.mubr.msk.bf16.mxu0 %vm612_vm0, %v611_v0  ;;  %v47_v3 = vld [vmem:[#allocation2] sm:$0xff]  ;;  %v48_v4 = vld [vmem:[#allocation2 + $0x8] sm:$0xff]  ;;  %vm73_vm1 = vcmask 261120   ;;  %s613_s17 = smov 112   ;;  %vm141_vm2 = vcmask 130048   ;;  %vm237_vm5 = vcmask 64512  }
  0x29   :  { %483 = vmatprep.subr.bf16.mxu1 %v611_v0  ;;  %485 = vmatprep.mubr.msk.bf16.mxu1 %vm612_vm0, %v611_v0  ;;  %v49_v5 = vpack.c.bf16 %v48_v4, %v47_v3  ;;  %v456_v6 = vld [vmem:[%s742_s3] ss:$0 sm:$0xff]  ;;  %v129_v21 = vshrl.u32 %v128_v19, 7  ;;  %v121_v22 = vld [vmem:[%s740_s1 + $0x1] sm:$0x1]  ;;  %vm267_vm6 = vcmask 1043456  }
  0x2a   :  { %476 = vmatpush3.bf16.msra.mxu0 %v523_v1  ;;  %v120_v20 = vld [vmem:[%s740_s1] sm:$0x1]  ;;  %vm123_vm4 = vcmp.eq.f32.partialorder %v121_v22, 0.0  ;;  %s614_s1 = smov 96   ;;  %s615_s21 = smov 32   ;;  %vm421_vm7 = vcmask 392192  }
  0x2b   :  { %477 = vmatprep.subr.bf16.mxu0 %v611_v0  ;;  %vm122_vm3 = vcmp.eq.f32.partialorder %v120_v20, 0.0  ;;  %v130_v23 = vsub.s32 0, %v129_v21  ;;  %v125_v26 = vsel %vm123_vm4, -1e+09, %v611_v0  ;;  %s616_s22 = smov 16   ;;  %s617_s23 = smov 80  }
  0x2c   :  { %v124_v24 = vsel %vm122_vm3, -1e+09, %v611_v0  ;;  %s618_s24 = smov 48   ;;  %vm424_vm8 = vcmask 523264   ;;  %vm427_vm9 = vcmask 654336   ;;  %vm430_vm10 = vcmask 785408  }
  0x2d   :  { %v131_v25 = vrot.slane %v124_v24, %v130_v23  ;;  %v135_v30 = vrot.slane %v125_v26, %v130_v23  ;;  %vm433_vm11 = vcmask 916480   ;;  %s619_s25 = smov [#allocation7]  }
  0x2e   :  { %478 = vmatpush3.bf16.msra.mxu0 %v524_v2  ;;  %s443_s26 = sshll.u32 %s619_s25, 4  ;;  %s444_s26 = int_to_ptr.vmem [resolvable:$true] %s443_s26 }
  0x2f   :  { %489 = vmatprep.subr.bf16.mxu0 %v611_v0  ;;  %s577_s27 = scalar_lea.vmem %s444_s26, 32  ;;  %p582_p3 = scmp.lt.s32.totalorder %s444_s26, %s444_s26 }
  0x30   :  { %p578_p2 = scmp.ne.s32.totalorder %s444_s26, %s577_s27  ;;  %p583_p4 = scmp.lt.s32.totalorder %s577_s27, %s577_s27 }
  0x31   :  { %480 = vmatmul.mubr.msk.bf16.vlgmr.msra.gmra.mrb[0].mxu0 %vm73_vm1, %v49_v5 }
  0x32   :  { %491 = vmatprep.mubr.msk.bf16.mxu0 %vm612_vm0, %v611_v0  ;;  %p584_p5 = por %p583_p4, %p582_p3 }
  0x34   :  { %p585_p6 = pnand %p584_p5, %p578_p2 }
 0x104   :  { %v111_v7 = vpop.f32.mrb[0].mxu0 }
 0x105   :  { %v112_v8 = vadd.f32 %v456_v6, %v111_v7  ;;  %v481_v9 = vpop.f32.mrb[1].mxu0 }
 0x106   :  { %v114_v10 = vpop.f32.mrb[2].mxu0 }
 0x107   :  { %v118_v11 = vpack.c.bf16 %v112_v8, %v112_v8  ;;  %v115_v12 = vadd.f32 %v456_v6, %v114_v10  ;;  %v482_v13 = vpop.f32.mrb[3].mxu0 }
 0x109   :  { %139 = vrot.lane.b32.xlu0 %v118_v11, %s613_s17  ;;  %v119_v14 = vpack.c.bf16 %v115_v12, %v115_v12 }
 0x10d   :  { %189 = vrot.lane.b32.xlu0 %v119_v14, %s613_s17 }
 0x17b   :  { %v140_v15 = vpop.permute.xlu0 %139 }
 0x17c   :  { %v146_v16 = vsel %vm141_vm2, %v140_v15, 0 }
 0x17d   :  { %484 = vmatpush3.bf16.xpose.msra.mxu1 %v146_v16 }
 0x17e   :  { %495 = vmatprep.subr.bf16.mxu1 %v611_v0 }
 0x17f   :  { %v190_v17 = vpop.permute.xlu0 %189 }
 0x180   :  { %v195_v18 = vsel %vm141_vm2, %v190_v17, 0 }
 0x181   :  { %490 = vmatpush3.bf16.xpose.msra.mxu0 %v195_v18 }
 0x182   :  { %501 = vmatprep.subr.bf16.mxu0 %v611_v0 }
 0x184   :  { %486 = vmatmul.mubr.msk.bf16.vlgmr.msra.gmra.mrb[0].mxu1 %vm141_vm2, %v118_v11 }
 0x185   :  { %497 = vmatprep.mubr.msk.bf16.mxu1 %vm612_vm0, %v611_v0 }
 0x188   :  { %492 = vmatmul.mubr.msk.bf16.vlgmr.msra.gmra.mrb[4].mxu0 %vm141_vm2, %v119_v14 }
 0x189   :  { %503 = vmatprep.mubr.msk.bf16.mxu0 %vm612_vm0, %v611_v0 }
 0x257   :  { %v182_v27 = vpop.f32.mrb[0].mxu1 }
 0x258   :  { %v183_v28 = vadd.f32 %v182_v27, %v131_v25  ;;  %v487_v29 = vpop.f32.mrb[1].mxu1 }
 0x259   :  { %v185_v31 = vpop.f32.mrb[2].mxu1 }
 0x25a   :  { %v488_v32 = vpop.f32.mrb[3].mxu1  ;;  %v238_v33 = vsel %vm237_vm5, %v183_v28, -inf }
 0x25b   :  { %239 = vmax.xlane.f32.xlu1 %v238_v33  ;;  %v231_v34 = vpop.f32.mrb[4].mxu0 }
 0x25c   :  { %v232_v35 = vadd.f32 %v231_v34, %v135_v30  ;;  %v493_v36 = vpop.f32.mrb[5].mxu0 }
 0x25d   :  { %v234_v37 = vpop.f32.mrb[6].mxu0 }
 0x25e   :  { %v494_v38 = vpop.f32.mrb[7].mxu0  ;;  %v241_v39 = vsel %vm237_vm5, %v232_v35, -inf }
 0x25f   :  { %242 = vmax.xlane.f32.xlu1 %v241_v39 }
 0x270   :  { %262 = vrot.lane.b32.xlu1 %v118_v11, %s614_s1 }
 0x2e8   :  { %v240_v40 = vpop.xlane.xlu1 %239 }
 0x2e9   :  { %v244_v41 = vsub.f32 %v183_v28, %v240_v40 }
 0x2eb   :  { %v246_v42 = vmul.f32 1.442695, %v244_v41 }
 0x2ec   :  { %v243_v43 = vpop.xlane.xlu1 %242 }
 0x2ed   :  { %525 = vpow2.f32 %v246_v42  ;;  %v245_v44 = vsub.f32 %v232_v35, %v243_v43 }
 0x2ef   :  { %v248_v45 = vmul.f32 1.442695, %v245_v44 }
 0x2f0   :  { %v263_v46 = vpop.permute.xlu1 %262 }
 0x2f1   :  { %527 = vpow2.f32 %v248_v45  ;;  %v269_v47 = vsel %vm267_vm6, %v263_v46, 0 }
 0x2f2   :  { %496 = vmatpush3.bf16.msra.mxu1 %v269_v47 }
 0x2f7   :  { %v526_v48 = vpop.eup %525 }
 0x2f8   :  { %v250_v49 = vsel %vm237_vm5, %v526_v48, 0.0 }
 0x2f9   :  { %251 = vadd.xlane.f32.xlu0 %v250_v49 }
 0x2fb   :  { %v528_v50 = vpop.eup %527 }
 0x2fc   :  { %v253_v51 = vsel %vm237_vm5, %v528_v50, 0.0 }
 0x2fd   :  { %254 = vadd.xlane.f32.xlu1 %v253_v51 }
 0x30e   :  { %311 = vrot.lane.b32.xlu1 %v119_v14, %s614_s1 }
 0x386   :  { %v252_v52 = vpop.xlane.xlu0 %251 }
 0x387   :  { %529 = vrcp.f32 %v252_v52 }
 0x38a   :  { %v255_v53 = vpop.xlane.xlu1 %254 }
 0x38b   :  { %531 = vrcp.f32 %v255_v53 }
 0x38e   :  { %v312_v54 = vpop.permute.xlu1 %311 }
 0x38f   :  { %v317_v55 = vsel %vm267_vm6, %v312_v54, 0 }
 0x390   :  { %502 = vmatpush3.bf16.msra.mxu0 %v317_v55 }
 0x391   :  { %v530_v56 = vpop.eup %529 }
 0x392   :  { %v258_v57 = vmul.f32 %v530_v56, %v526_v48 }
 0x394   :  { %v260_v58 = vpack.c.bf16 %v258_v57, %v258_v57 }
 0x395   :  { %v532_v59 = vpop.eup %531 }
 0x396   :  { %v259_v60 = vmul.f32 %v532_v59, %v528_v50  ;;  %498 = vmatmul.mubr.msk.bf16.vlgmr.msra.gmra.mrb[4].mxu1 %vm237_vm5, %v260_v58 }
 0x398   :  { %v261_v61 = vpack.c.bf16 %v259_v60, %v259_v60 }
 0x39a   :  { %504 = vmatmul.mubr.msk.bf16.vlgmr.msra.gmra.mrb[8].mxu0 %vm237_vm5, %v261_v61 }
 0x469   :  { %v305_v62 = vpop.f32.mrb[4].mxu1 }
 0x46a   :  { %v499_v63 = vpop.f32.mrb[5].mxu1  ;;  %v369_v0 = vrot.slane %v305_v62, 2  ;;  %v361_v1 = vrot.slane %v305_v62, 1  ;;  %v393_v6 = vrot.slane %v305_v62, 5  ;;  %v377_v7 = vrot.slane %v305_v62, 3 }
 0x46b   :  { %v308_v2 = vpop.f32.mrb[6].mxu1  ;;  %v401_v10 = vrot.slane %v305_v62, 6  ;;  %v385_v11 = vrot.slane %v305_v62, 4  ;;  %v409_v12 = vrot.slane %v305_v62, 7 }
 0x46c   :  { %371 = vrot.lane.b32.xlu0 %v369_v0, %s615_s21  ;;  %363 = vrot.lane.b32.xlu1 %v361_v1, %s616_s22  ;;  %v500_v3 = vpop.f32.mrb[7].mxu1 }
 0x46d   :  { %v353_v4 = vpop.f32.mrb[8].mxu0 }
 0x46e   :  { %v505_v5 = vpop.f32.mrb[9].mxu0  ;;  %v362_v13 = vrot.slane %v353_v4, 1  ;;  %v370_v14 = vrot.slane %v353_v4, 2  ;;  %v378_v15 = vrot.slane %v353_v4, 3  ;;  %v386_v16 = vrot.slane %v353_v4, 4 }
 0x46f   :  { %v356_v8 = vpop.f32.mrb[10].mxu0  ;;  %v394_v17 = vrot.slane %v353_v4, 5  ;;  %v402_v18 = vrot.slane %v353_v4, 6  ;;  %v410_v19 = vrot.slane %v353_v4, 7 }
 0x470   :  { %395 = vrot.lane.b32.xlu0 %v393_v6, %s617_s23  ;;  %379 = vrot.lane.b32.xlu1 %v377_v7, %s618_s24  ;;  %v506_v9 = vpop.f32.mrb[11].mxu0 }
 0x474   :  { %403 = vrot.lane.b32.xlu0 %v401_v10, %s614_s1  ;;  %387 = vrot.lane.b32.xlu1 %v385_v11, %s609_s0 }
 0x478   :  { %411 = vrot.lane.b32.xlu0 %v409_v12, %s613_s17  ;;  %365 = vrot.lane.b32.xlu1 %v362_v13, %s616_s22 }
 0x47c   :  { %373 = vrot.lane.b32.xlu1 %v370_v14, %s615_s21 }
 0x480   :  { %381 = vrot.lane.b32.xlu1 %v378_v15, %s618_s24 }
 0x484   :  { %389 = vrot.lane.b32.xlu1 %v386_v16, %s609_s0 }
 0x488   :  { %397 = vrot.lane.b32.xlu1 %v394_v17, %s617_s23 }
 0x48c   :  { %405 = vrot.lane.b32.xlu1 %v402_v18, %s614_s1 }
 0x490   :  { %413 = vrot.lane.b32.xlu1 %v410_v19, %s613_s17 }
 0x4de   :  { %v372_v20 = vpop.permute.xlu0 %371  ;;  %v364_v21 = vpop.permute.xlu1 %363 }
 0x4df   :  { %v417_v22 = vsel %vm141_vm2, %v305_v62, %v364_v21 }
 0x4e0   :  { %v419_v25 = vsel %vm73_vm1, %v417_v22, %v372_v20 }
 0x4e2   :  { %v396_v23 = vpop.permute.xlu0 %395  ;;  %v380_v24 = vpop.permute.xlu1 %379 }
 0x4e3   :  { %v422_v26 = vsel %vm421_vm7, %v419_v25, %v380_v24 }
 0x4e6   :  { %v404_v27 = vpop.permute.xlu0 %403  ;;  %v388_v28 = vpop.permute.xlu1 %387 }
 0x4e7   :  { %v425_v29 = vsel %vm424_vm8, %v422_v26, %v388_v28 }
 0x4e8   :  { %v428_v30 = vsel %vm427_vm9, %v425_v29, %v396_v23 }
 0x4e9   :  { %v431_v31 = vsel %vm430_vm10, %v428_v30, %v404_v27 }
 0x4ea   :  { %v412_v32 = vpop.permute.xlu0 %411  ;;  %v366_v33 = vpop.permute.xlu1 %365 }
 0x4eb   :  { %v434_v34 = vsel %vm433_vm11, %v431_v31, %v412_v32  ;;  %v418_v39 = vsel %vm141_vm2, %v353_v4, %v366_v33 }
 0x4ec   :  { %436 = vst [vmem:[#allocation7] sm:$0x1] %v434_v34 }
 0x4ee   :  { %v374_v35 = vpop.permute.xlu1 %373 }
 0x4ef   :  { %v420_v40 = vsel %vm73_vm1, %v418_v39, %v374_v35 }
 0x4f2   :  { %v382_v36 = vpop.permute.xlu1 %381 }
 0x4f3   :  { %v423_v42 = vsel %vm421_vm7, %v420_v40, %v382_v36 }
 0x4f6   :  { %v390_v37 = vpop.permute.xlu1 %389 }
 0x4f7   :  { %v426_v43 = vsel %vm424_vm8, %v423_v42, %v390_v37 }
 0x4fa   :  { %v398_v38 = vpop.permute.xlu1 %397 }
 0x4fb   :  { %v429_v44 = vsel %vm427_vm9, %v426_v43, %v398_v38 }
 0x4fe   :  { %v406_v41 = vpop.permute.xlu1 %405 }
 0x4ff   :  { %v432_v45 = vsel %vm430_vm10, %v429_v44, %v406_v41 }
 0x502   :  { %v414_v46 = vpop.permute.xlu1 %413 }
 0x503   :  { %v435_v47 = vsel %vm433_vm11, %v432_v45, %v414_v46 }
 0x504   :  { %437 = vst [vmem:[#allocation7 + $0x1] sm:$0x1] %v435_v47 }
 0x505   :  { %588 = shalt.err (!%p585_p6)
}
 0x506   :  { %s589_s30 = scalar_lea.hbm %s743_s4, 32 }
 0x507   :  { %p590_p7 = scmp.ne.s32.totalorder %s743_s4, %s589_s30  ;;  %p593_p8 = scmp.lt.u32.totalorder %s589_s30, %s743_s4 }
 0x509   :  { %p595_p9 = pnand %p593_p8, %p590_p7 }
 0x50b   :  { %598 = shalt.err (!%p595_p9)
}
 0x50c   :  { %s620_s9 = smov 1  }
 0x50d   :  { %449 = dma.vmem_to_hbm [thread:$0]  %s444_s26, 32, %s743_s4, [#allocation4], %s616_s22, %s616_s22, %s620_s9  }
 0x50e   :  { %603 = dma.done.wait [#allocation4], 32  }
 0x50f   :  { %604 = vsyncadd [#allocation4], 4294967264 }
 0x510   :  { %453 = vsyncpa [#allocation3], 1 }
 0x511   :  { %454 = vsyncpa [#allocation6], 1 }
 0x512   :  { %455 = vsyncpa [#allocation4], 1 }

</bundles_post_ra>
